<compile_context>
chip_gen: v6e
topology: v6e:2x2x1
jax: 0.10.0
libtpu: 0.0.40
codegen_flags: <defaults>
</compile_context>

<pallas_src>
import math

import jax
import jax.numpy as jnp
from jax import lax
from jax.experimental import pallas as pl
from jax.experimental.pallas import tpu as pltpu


_INV_SQRT2 = 1.0 / math.sqrt(2.0)


def _gelu_exact(x):
    # Matches torch.nn.GELU() default (erf-based, not the tanh approximation).
    return 0.5 * x * (1.0 + lax.erf(x * _INV_SQRT2))


def _round_up(x, mult):
    return ((x + mult - 1) // mult) * mult


def _mlp_kernel(x_ref, w1_ref, b1_ref, w2_ref, b2_ref, o_ref, acc_ref):
    # Grid: (row tiles [parallel], hidden column blocks [arbitrary]).
    #   x_ref:  (tm, dim)
    #   w1_ref: (dim, th)        b1_ref: (1, th)
    #   w2_ref: (th, n_pad)      b2_ref: (1, n_pad)
    #   o_ref:  (tm, n_pad)      acc_ref: (tm, n_pad) f32 VMEM scratch
    j = pl.program_id(1)

    @pl.when(j == 0)
    def _init():
        acc_ref[...] = jnp.zeros_like(acc_ref)

    # fc1 column block (MXU) + bias, f32 accumulation.
    h = jnp.dot(x_ref[...], w1_ref[...], preferred_element_type=jnp.float32)
    h = h + b1_ref[...].astype(jnp.float32)

    # Exact GELU in f32 (padded hidden columns are GELU(0) == 0).
    h = _gelu_exact(h)

    # Partial fc2 contribution of this hidden block; cast operand back to the
    # weight dtype so bf16 weights run at full MXU rate, accumulate in f32.
    acc_ref[...] += jnp.dot(h.astype(w2_ref.dtype), w2_ref[...],
                            preferred_element_type=jnp.float32)

    @pl.when(j == pl.num_programs(1) - 1)
    def _finalize():
        o_ref[...] = (acc_ref[...]
                      + b2_ref[...].astype(jnp.float32)).astype(o_ref.dtype)


def _vmem_footprint(tm, th, dim, n_pad, x_bytes, w_bytes, out_bytes):
    """Rough per-step VMEM bytes (double-buffered pipeline blocks + scratch)."""
    x_t = 2 * tm * dim * x_bytes            # x row tile
    w1_t = 2 * dim * th * w_bytes           # fc1 weight column block
    b1_t = 2 * th * 4                       # fc1 bias block (f32)
    w2_t = 2 * th * n_pad * w_bytes         # fc2 weight row block
    b2_t = 2 * n_pad * 4                    # fc2 bias (f32)
    o_t = 2 * tm * n_pad * out_bytes        # output tile
    acc = tm * n_pad * 4                    # f32 accumulator scratch
    interm = 2 * tm * th * 4                # fc1 intermediate / GELU temp (f32)
    return x_t + w1_t + b1_t + w2_t + b2_t + o_t + acc + interm


def _choose_tiles(m, dim, hidden, n_pad, x_bytes, w_bytes, out_bytes,
                  vmem_budget, max_row_tile=None):
    """Pick (tm, th) under the VMEM budget; prefer big row tiles, then big th."""
    hidden_pad = _round_up(hidden, 128)
    th_cands = [c for c in (1024, 512, 256, 128) if hidden_pad % c == 0]
    tm_cands = [c for c in (1024, 512, 256, 128, 64, 32, 16, 8)
                if max_row_tile is None or c <= max_row_tile]
    if not tm_cands:
        tm_cands = [8]
    for tmc in tm_cands:                    # big tm -> weights streamed fewer times
        for th in th_cands:                 # then biggest hidden block that fits
            tm = tmc if tmc < m else m      # full-extent block for tiny m
            fp = _vmem_footprint(tm, th, dim, n_pad, x_bytes, w_bytes, out_bytes)
            if fp <= vmem_budget:
                return tm, th, hidden_pad, fp
    # Fallback: smallest tiles (extreme dims may still exceed the budget).
    tm = 8 if m > 8 else m
    th = 128
    return tm, th, hidden_pad, _vmem_footprint(tm, th, dim, n_pad,
                                               x_bytes, w_bytes, out_bytes)


def simoutput_forward(x, w1, b1, w2, b2, *, operand_dtype=None,
                      max_row_tile=None):
    """Fused Simoutput / Mlp forward: GELU(x @ w1 + b1) @ w2 + b2.

    operand_dtype: optional dtype (e.g. jnp.bfloat16) for x / w1 / w2 so the
      MXU matmuls run at full rate; GELU / biases / accumulation stay in f32
      and the output keeps the original x dtype.
    """
    out_dtype = x.dtype
    *lead, dim = x.shape
    hidden = w1.shape[1]
    number = w2.shape[1]
    assert w1.shape == (dim, hidden)
    assert w2.shape == (hidden, number)
    assert b1.shape == (hidden,)
    assert b2.shape == (number,)

    if operand_dtype is not None:
        x = x.astype(operand_dtype)
        w1 = w1.astype(operand_dtype)
        w2 = w2.astype(operand_dtype)

    m = math.prod(lead) if lead else 1
    x2 = x.reshape(m, dim)                  # fold batch/seq into matmul rows

    # Lane-dense padding of the output (and hidden) axes to multiples of 128.
    n_pad = _round_up(number, 128)

    x_bytes = jnp.dtype(x2.dtype).itemsize
    w_bytes = jnp.dtype(w1.dtype).itemsize
    out_bytes = jnp.dtype(out_dtype).itemsize

    try:
        vmem_cap = int(pltpu.get_tpu_info().vmem_capacity_bytes)
    except Exception:                       # pragma: no cover - conservative default
        vmem_cap = 64 * 1024 * 1024         # v7x per-TC VMEM
    vmem_budget = int(vmem_cap * 0.7)

    tm, th, hidden_pad, footprint = _choose_tiles(
        m, dim, hidden, n_pad, x_bytes, w_bytes, out_bytes,
        vmem_budget, max_row_tile=max_row_tile)

    # Zero-pad parameters; GELU(0)=0 and zero w2 rows/cols keep results exact.
    w1p = w1 if hidden_pad == hidden else jnp.pad(
        w1, ((0, 0), (0, hidden_pad - hidden)))
    b1p = b1 if hidden_pad == hidden else jnp.pad(b1, (0, hidden_pad - hidden))
    w2p = w2
    if hidden_pad != hidden:
        w2p = jnp.pad(w2p, ((0, hidden_pad - hidden), (0, 0)))
    if n_pad != number:
        w2p = jnp.pad(w2p, ((0, 0), (0, n_pad - number)))
    b2p = b2 if n_pad == number else jnp.pad(b2, (0, n_pad - number))

    b1_2d = b1p.reshape(1, hidden_pad).astype(jnp.float32)
    b2_2d = b2p.reshape(1, n_pad).astype(jnp.float32)

    vmem_limit = int(min(vmem_cap * 0.9,
                         max(2 * footprint, 32 * 1024 * 1024)))

    grid = (pl.cdiv(m, tm), hidden_pad // th)

    out_padded = pl.pallas_call(
        _mlp_kernel,
        out_shape=jax.ShapeDtypeStruct((m, n_pad), out_dtype),
        grid_spec=pltpu.PrefetchScalarGridSpec(
            num_scalar_prefetch=0,
            grid=grid,
            in_specs=[
                pl.BlockSpec((tm, dim), lambda i, j: (i, 0)),        # x rows
                pl.BlockSpec((dim, th), lambda i, j: (0, j)),        # fc1 W cols
                pl.BlockSpec((1, th), lambda i, j: (0, j)),          # fc1 b
                pl.BlockSpec((th, n_pad), lambda i, j: (j, 0)),      # fc2 W rows
                pl.BlockSpec((1, n_pad), lambda i, j: (0, 0)),       # fc2 b
            ],
            out_specs=pl.BlockSpec((tm, n_pad), lambda i, j: (i, 0)),
            scratch_shapes=[pltpu.VMEM((tm, n_pad), jnp.float32)],
        ),
        compiler_params=pltpu.CompilerParams(
            dimension_semantics=("parallel", "arbitrary"),
            vmem_limit_bytes=vmem_limit),
    )(x2, w1p, b1_2d, w2p, b2_2d)

    out = out_padded[:, :number] if n_pad != number else out_padded
    return out.reshape(*lead, number)


def simoutput_reference(x, w1, b1, w2, b2):
    """Plain-JAX reference mirroring the PyTorch forward exactly."""
    h = x @ w1 + b1
    h = jax.nn.gelu(h, approximate=False)
    return h @ w2 + b2


if __name__ == "__main__":
    # Small shapes consistent with the module: x is (batch, seq, dim).
    B, N, dim, number = 2, 8, 32, 16

    key = jax.random.PRNGKey(0)
    kx, kw1, kb1, kw2, kb2 = jax.random.split(key, 5)

    x = jax.random.normal(kx, (B, N, dim), dtype=jnp.float32)
    # nn.Linear-like synthetic parameters, stored (in, out); hidden == dim.
    w1 = jax.random.normal(kw1, (dim, dim), dtype=jnp.float32) * (dim ** -0.5)
    b1 = jax.random.normal(kb1, (dim,), dtype=jnp.float32) * 0.01
    w2 = jax.random.normal(kw2, (dim, number), dtype=jnp.float32) * (dim ** -0.5)
    b2 = jax.random.normal(kb2, (number,), dtype=jnp.float32) * 0.01

    ref = simoutput_reference(x, w1, b1, w2, b2)

    # f32 path.
    out = jax.block_until_ready(simoutput_forward(x, w1, b1, w2, b2))
    assert out.shape == (B, N, number)
    assert jnp.allclose(out, ref, atol=1e-4, rtol=1e-4), "f32 mismatch vs reference"

    # bf16 MXU-operand path (GELU / bias / accumulation stay f32) — loose
    # tolerance because operands are rounded to bf16 before the matmuls.
    out_bf16 = jax.block_until_ready(
        simoutput_forward(x, w1, b1, w2, b2, operand_dtype=jnp.bfloat16))
    assert out_bf16.shape == (B, N, number)
    assert jnp.allclose(out_bf16, ref, atol=1e-1, rtol=1e-1), "bf16 mismatch"

    # Odd shapes: exercises lane padding (number=24->128, hidden=48->128) and a
    # full-extent (non multiple-of-8) row block with m = 21.
    B2, N2, dim2, number2 = 3, 7, 48, 24
    k2 = jax.random.PRNGKey(1)
    kx2, kw12, kb12, kw22, kb22 = jax.random.split(k2, 5)
    xb = jax.random.normal(kx2, (B2, N2, dim2), dtype=jnp.float32)
    w1b = jax.random.normal(kw12, (dim2, dim2), dtype=jnp.float32) * (dim2 ** -0.5)
    b1b = jax.random.normal(kb12, (dim2,), dtype=jnp.float32) * 0.01
    w2b = jax.random.normal(kw22, (dim2, number2), dtype=jnp.float32) * (dim2 ** -0.5)
    b2b = jax.random.normal(kb22, (number2,), dtype=jnp.float32) * 0.01
    ref2 = simoutput_reference(xb, w1b, b1b, w2b, b2b)

    out2 = jax.block_until_ready(simoutput_forward(xb, w1b, b1b, w2b, b2b))
    assert out2.shape == (B2, N2, number2)
    assert jnp.allclose(out2, ref2, atol=5e-4, rtol=5e-4), "odd-shape mismatch"

    # Ragged row tiling (cdiv-masked last block): force tm=8 over m=21 rows.
    out3 = jax.block_until_ready(
        simoutput_forward(xb, w1b, b1b, w2b, b2b, max_row_tile=8))
    assert jnp.allclose(out3, ref2, atol=5e-4, rtol=5e-4), "ragged-tile mismatch"

    print("KERNEL_OK")
</pallas_src>

<mosaic_0001>
module attributes {stable_mosaic.version = 11 : i64} {
  func.func @_mlp_kernel(%arg0: i32, %arg1: i32, %arg2: memref<16x32xf32, #tpu.memory_space<vmem>>, %arg3: memref<32x128xf32, #tpu.memory_space<vmem>>, %arg4: memref<1x128xf32, #tpu.memory_space<vmem>>, %arg5: memref<128x128xf32, #tpu.memory_space<vmem>>, %arg6: memref<1x128xf32, #tpu.memory_space<vmem>>, %arg7: memref<16x128xf32, #tpu.memory_space<vmem>>, %arg8: memref<16x128xf32, #tpu.memory_space<vmem>>) attributes {dimension_semantics = [#tpu.dimension_semantics<parallel>, #tpu.dimension_semantics<arbitrary>], iteration_bounds = array<i64: 1, 1>, scalar_prefetch = 0 : i64, scratch_operands = 1 : i64, tpu.core_type = #tpu.core_type<tc>, window_params = [{transform_indices = @transform_0, window_bounds = array<i64: 16, 32>}, {transform_indices = @transform_1, window_bounds = array<i64: 32, 128>}, {transform_indices = @transform_2, window_bounds = array<i64: 1, 128>}, {transform_indices = @transform_3, window_bounds = array<i64: 128, 128>}, {pipeline_mode = #tpu.pipeline_mode<synchronous>, transform_indices = @transform_4, window_bounds = array<i64: 1, 128>}, {transform_indices = @transform_5, window_bounds = array<i64: 16, 128>}]} {
    %c0_i32 = arith.constant 0 : i32
    %0 = arith.cmpi eq, %arg1, %c0_i32 : i32
    %1 = arith.extui %0 : i1 to i32
    %c0_i32_0 = arith.constant 0 : i32
    %2 = arith.cmpi ne, %1, %c0_i32_0 : i32
    scf.if %2 {
      %cst_18 = arith.constant 0.000000e+00 : f32
      %25 = vector.broadcast %cst_18 : f32 to vector<16x128xf32>
      %c0_19 = arith.constant 0 : index
      %c0_20 = arith.constant 0 : index
      %26 = vector.load %arg8[%c0_19, %c0_20] : memref<16x128xf32, #tpu.memory_space<vmem>>, vector<16x128xf32>
      tpu.vector_store %arg8[%c0_19, %c0_20], %25 {strides = array<i32>} : memref<16x128xf32, #tpu.memory_space<vmem>>, vector<16x128xf32>,
    } else {
    }
    %c0 = arith.constant 0 : index
    %c0_1 = arith.constant 0 : index
    %3 = vector.load %arg2[%c0, %c0_1] : memref<16x32xf32, #tpu.memory_space<vmem>>, vector<16x32xf32>
    %c0_2 = arith.constant 0 : index
    %c0_3 = arith.constant 0 : index
    %4 = vector.load %arg3[%c0_2, %c0_3] : memref<32x128xf32, #tpu.memory_space<vmem>>, vector<32x128xf32>
    %cst = arith.constant dense<0.000000e+00> : vector<16x128xf32>
    %5 = tpu.matmul %3, %4, %cst {dimension_numbers = #tpu.dot_dimension_numbers<[1], [0], [0], [1], [0, 0, 1, 1], [], []>} : vector<16x32xf32>, vector<32x128xf32>, vector<16x128xf32> -> vector<16x128xf32>
    %c0_4 = arith.constant 0 : index
    %c0_5 = arith.constant 0 : index
    %6 = vector.load %arg4[%c0_4, %c0_5] : memref<1x128xf32, #tpu.memory_space<vmem>>, vector<1x128xf32>
    %7 = vector.broadcast %6 : vector<1x128xf32> to vector<16x128xf32>
    %8 = arith.addf %5, %7 : vector<16x128xf32>
    %cst_6 = arith.constant 5.000000e-01 : f32
    %9 = vector.broadcast %cst_6 : f32 to vector<16x128xf32>
    %10 = arith.mulf %9, %8 : vector<16x128xf32>
    %cst_7 = arith.constant 0.707106769 : f32
    %11 = vector.broadcast %cst_7 : f32 to vector<16x128xf32>
    %12 = arith.mulf %8, %11 : vector<16x128xf32>
    %13 = math.erf %12 : vector<16x128xf32>
    %cst_8 = arith.constant 1.000000e+00 : f32
    %14 = vector.broadcast %cst_8 : f32 to vector<16x128xf32>
    %15 = arith.addf %14, %13 : vector<16x128xf32>
    %16 = arith.mulf %10, %15 : vector<16x128xf32>
    %c0_9 = arith.constant 0 : index
    %c0_10 = arith.constant 0 : index
    %17 = vector.load %arg8[%c0_9, %c0_10] : memref<16x128xf32, #tpu.memory_space<vmem>>, vector<16x128xf32>
    %c0_11 = arith.constant 0 : index
    %c0_12 = arith.constant 0 : index
    %18 = vector.load %arg5[%c0_11, %c0_12] : memref<128x128xf32, #tpu.memory_space<vmem>>, vector<128x128xf32>
    %cst_13 = arith.constant dense<0.000000e+00> : vector<16x128xf32>
    %19 = tpu.matmul %16, %18, %cst_13 {dimension_numbers = #tpu.dot_dimension_numbers<[1], [0], [0], [1], [0, 0, 1, 1], [], []>} : vector<16x128xf32>, vector<128x128xf32>, vector<16x128xf32> -> vector<16x128xf32>
    %20 = arith.addf %17, %19 : vector<16x128xf32>
    %c0_14 = arith.constant 0 : index
    %c0_15 = arith.constant 0 : index
    %21 = vector.load %arg8[%c0_14, %c0_15] : memref<16x128xf32, #tpu.memory_space<vmem>>, vector<16x128xf32>
    tpu.vector_store %arg8[%c0_14, %c0_15], %20 {strides = array<i32>} : memref<16x128xf32, #tpu.memory_space<vmem>>, vector<16x128xf32>,
    %c0_i32_16 = arith.constant 0 : i32
    %22 = arith.cmpi eq, %arg1, %c0_i32_16 : i32
    %23 = arith.extui %22 : i1 to i32
    %c0_i32_17 = arith.constant 0 : i32
    %24 = arith.cmpi ne, %23, %c0_i32_17 : i32
    scf.if %24 {
      %c0_18 = arith.constant 0 : index
      %c0_19 = arith.constant 0 : index
      %25 = vector.load %arg8[%c0_18, %c0_19] : memref<16x128xf32, #tpu.memory_space<vmem>>, vector<16x128xf32>
      %c0_20 = arith.constant 0 : index
      %c0_21 = arith.constant 0 : index
      %26 = vector.load %arg6[%c0_20, %c0_21] : memref<1x128xf32, #tpu.memory_space<vmem>>, vector<1x128xf32>
      %27 = vector.broadcast %26 : vector<1x128xf32> to vector<16x128xf32>
      %28 = arith.addf %25, %27 : vector<16x128xf32>
      %c0_22 = arith.constant 0 : index
      %c0_23 = arith.constant 0 : index
      %29 = vector.load %arg7[%c0_22, %c0_23] : memref<16x128xf32, #tpu.memory_space<vmem>>, vector<16x128xf32>
      tpu.vector_store %arg7[%c0_22, %c0_23], %28 {strides = array<i32>} : memref<16x128xf32, #tpu.memory_space<vmem>>, vector<16x128xf32>,
    } else {
    }
    return
  }
  func.func @transform_0(%arg0: i32, %arg1: i32) -> (i32, i32) {
    %c0_i32 = arith.constant 0 : i32
    %c0_i32_0 = arith.constant 0 : i32
    return %arg0, %c0_i32 : i32, i32
  }
  func.func @transform_1(%arg0: i32, %arg1: i32) -> (i32, i32) {
    %c0_i32 = arith.constant 0 : i32
    %c0_i32_0 = arith.constant 0 : i32
    return %c0_i32, %arg1 : i32, i32
  }
  func.func @transform_2(%arg0: i32, %arg1: i32) -> (i32, i32) {
    %c0_i32 = arith.constant 0 : i32
    %c0_i32_0 = arith.constant 0 : i32
    return %c0_i32, %arg1 : i32, i32
  }
  func.func @transform_3(%arg0: i32, %arg1: i32) -> (i32, i32) {
    %c0_i32 = arith.constant 0 : i32
    %c0_i32_0 = arith.constant 0 : i32
    return %arg1, %c0_i32 : i32, i32
  }
  func.func @transform_4(%arg0: i32, %arg1: i32) -> (i32, i32) {
    %c0_i32 = arith.constant 0 : i32
    %c0_i32_0 = arith.constant 0 : i32
    %c0_i32_1 = arith.constant 0 : i32
    return %c0_i32, %c0_i32_0 : i32, i32
  }
  func.func @transform_5(%arg0: i32, %arg1: i32) -> (i32, i32) {
    %c0_i32 = arith.constant 0 : i32
    %c0_i32_0 = arith.constant 0 : i32
    return %arg0, %c0_i32 : i32, i32
  }
}

</mosaic_0001>

<bundles_post_ra>
// kernel: tpu_custom_call.1
= control target key start
LH: loop header
LB: loop body
LE: loop exit
PB: predicated region body
PF: predicated region fallthrough
CT: control target
= control target key end

     0   :  { %10 = vsyncpa [#allocation4], 0  ;;  %s542_s0 = inlined_call_operand.hbm [shape: f32[16,32], index: 0, kind: input, shape index: {}]   ;;  %s543_s1 = inlined_call_operand.hbm [shape: f32[32,128], index: 1, kind: input, shape index: {}]   ;;  %s544_s2 = inlined_call_operand.vmem [shape: f32[1,128], index: 2, kind: input, shape index: {}]   ;;  %s545_s3 = inlined_call_operand.hbm [shape: f32[128,128], index: 3, kind: input, shape index: {}]   ;;  %s546_s4 = inlined_call_operand.vmem [shape: f32[1,128], index: 4, kind: input, shape index: {}]   ;;  %s547_s5 = inlined_call_operand.hbm [shape: f32[16,128], index: 5, kind: output, shape index: {}]  }
   0x1   :  { %11 = vsyncpa [#allocation7], 0 }
   0x2   :  { %12 = vsyncpa [#allocation5], 0  ;;  %s474_s18 = smov [#allocation6]   ;;  %s475_s20 = smov [#allocation3]  }
   0x3   :  { %s30_s19 = sshll.u32 %s474_s18, 4  ;;  %s18_s21 = sshll.u32 %s475_s20, 4  ;;  %s31_s19 = int_to_ptr.vmem [resolvable:$true] %s30_s19  ;;  %s19_s21 = int_to_ptr.vmem [resolvable:$true] %s18_s21 }
   0x4   :  { %s396_s22 = scalar_lea.vmem %s31_s19, 512  ;;  %p401_p1 = scmp.lt.s32.totalorder %s31_s19, %s31_s19 }
   0x5   :  { %p397_p0 = scmp.ne.s32.totalorder %s31_s19, %s396_s22  ;;  %p402_p2 = scmp.lt.s32.totalorder %s396_s22, %s396_s22 }
   0x7   :  { %p403_p3 = por %p402_p2, %p401_p1 }
   0x9   :  { %p404_p4 = pnand %p403_p3, %p397_p0 }
   0xb   :  { %407 = shalt.err (!%p404_p4)
}
   0xc   :  { %s476_s23 = smov 128   ;;  %s477_s24 = smov 8  }
   0xd   :  { %36 = dma.hbm_to_vmem [thread:$0]  %s543_s1, 512, %s31_s19, [#allocation7], %s476_s23, %s476_s23, %s477_s24  }
   0xe   :  { %s416_s27 = scalar_lea.vmem %s19_s21, 256  ;;  %p421_p6 = scmp.lt.s32.totalorder %s19_s21, %s19_s21 }
   0xf   :  { %p417_p5 = scmp.ne.s32.totalorder %s19_s21, %s416_s27  ;;  %p422_p7 = scmp.lt.s32.totalorder %s416_s27, %s416_s27 }
  0x11   :  { %p423_p8 = por %p422_p7, %p421_p6 }
  0x13   :  { %p424_p9 = pnand %p423_p8, %p417_p5 }
  0x15   :  { %427 = shalt.err (!%p424_p9)
}
  0x16   :  { %24 = dma.hbm_to_vmem [thread:$0]  %s542_s0, 256, %s19_s21, [#allocation4], %s476_s23, %s476_s23, %s477_s24  }
  0x17   :  { %s478_s30 = smov [#allocation8]  }
  0x18   :  { %s44_s6 = sshll.u32 %s478_s30, 4  ;;  %s45_s6 = int_to_ptr.vmem [resolvable:$true] %s44_s6 }
  0x19   :  { %s436_s7 = scalar_lea.vmem %s45_s6, 2048  ;;  %p441_p11 = scmp.lt.s32.totalorder %s45_s6, %s45_s6 }
  0x1a   :  { %p437_p10 = scmp.ne.s32.totalorder %s45_s6, %s436_s7  ;;  %p442_p12 = scmp.lt.s32.totalorder %s436_s7, %s436_s7 }
  0x1c   :  { %p443_p13 = por %p442_p12, %p441_p11 }
  0x1e   :  { %p444_p0 = pnand %p443_p13, %p437_p10 }
  0x20   :  { %447 = shalt.err (!%p444_p0)
}
  0x21   :  { %50 = dma.hbm_to_vmem [thread:$0]  %s545_s3, 2048, %s45_s6, [#allocation7], %s476_s23, %s476_s23, %s477_s24  }
  0x22   :  { %468 = dma.done.wait [#allocation4], 256  }
  0x23   :  { %469 = vsyncadd [#allocation4], 4294967040 }
  0x24   :  { %470 = dma.done.wait [#allocation7], 2560  }
  0x25   :  { %471 = vsyncadd [#allocation7], 4294964736  ;;  %vm81_vm0 = vcmask 261120   ;;  %v73_v0 = vld [vmem:[#allocation6 + $0x18] sm:$0xff]  ;;  %v72_v1 = vld [vmem:[#allocation6 + $0x10] sm:$0xff]  ;;  %s479_s10 = smov [#allocation9]  }
  0x26   :  { %332 = vmatprep.subr.mxu0 %v73_v0  ;;  %v68_v2 = vld [vmem:[#allocation3] sm:$0xff]  ;;  %v71_v3 = vld [vmem:[#allocation6 + $0x8] sm:$0xff]  ;;  %v190_v4 = vld [vmem:[#allocation8 + $0x78] sm:$0xff]  ;;  %s291_s11 = sshll.u32 %s479_s10, 4  ;;  %s292_s11 = int_to_ptr.vmem [resolvable:$true] %s291_s11 }
  0x27   :  { %333 = vmatpush3.msra.mxu0 %v73_v0  ;;  %340 = vmatprep.mubr.msk.f32.mxu0 %vm81_vm0, %v68_v2  ;;  %v189_v5 = vld [vmem:[#allocation8 + $0x70] sm:$0xff]  ;;  %v70_v6 = vld [vmem:[#allocation6] sm:$0xff]  ;;  %v188_v7 = vld [vmem:[#allocation8 + $0x68] sm:$0xff]  ;;  %s448_s12 = scalar_lea.vmem %s292_s11, 256  ;;  %p453_p2 = scmp.lt.s32.totalorder %s292_s11, %s292_s11 }
  0x28   :  { %334 = vmatprep.subr.mxu0 %v72_v1  ;;  %343 = vmatprep.subr.mxu1 %v190_v4  ;;  %v69_v8 = vld [vmem:[#allocation3 + $0x8] sm:$0xff]  ;;  %v187_v9 = vld [vmem:[#allocation8 + $0x60] sm:$0xff]  ;;  %v185_v11 = vld [vmem:[#allocation8 + $0x50] sm:$0xff]  ;;  %p449_p1 = scmp.ne.s32.totalorder %s292_s11, %s448_s12  ;;  %p454_p3 = scmp.lt.s32.totalorder %s448_s12, %s448_s12 }
  0x29   :  { %335 = vmatpush3.msra.mxu0 %v72_v1  ;;  %344 = vmatpush3.msra.mxu1 %v190_v4  ;;  %v186_v10 = vld [vmem:[#allocation8 + $0x58] sm:$0xff]  ;;  %v184_v12 = vld [vmem:[#allocation8 + $0x48] sm:$0xff]  ;;  %v183_v13 = vld [vmem:[#allocation8 + $0x40] sm:$0xff] }
  0x2a   :  { %336 = vmatprep.subr.mxu0 %v71_v3  ;;  %345 = vmatprep.subr.mxu1 %v189_v5  ;;  %v182_v14 = vld [vmem:[#allocation8 + $0x38] sm:$0xff]  ;;  %v181_v15 = vld [vmem:[#allocation8 + $0x30] sm:$0xff]  ;;  %v180_v16 = vld [vmem:[#allocation8 + $0x28] sm:$0xff]  ;;  %p455_p4 = por %p454_p3, %p453_p2 }
  0x2b   :  { %337 = vmatpush3.msra.mxu0 %v71_v3  ;;  %346 = vmatpush3.msra.mxu1 %v189_v5  ;;  %v179_v17 = vld [vmem:[#allocation8 + $0x20] sm:$0xff]  ;;  %v178_v18 = vld [vmem:[#allocation8 + $0x18] sm:$0xff]  ;;  %v177_v19 = vld [vmem:[#allocation8 + $0x10] sm:$0xff] }
  0x2c   :  { %338 = vmatprep.subr.mxu0 %v70_v6  ;;  %347 = vmatprep.subr.mxu1 %v188_v7  ;;  %v176_v20 = vld [vmem:[#allocation8 + $0x8] sm:$0xff]  ;;  %v175_v21 = vld [vmem:[#allocation8] sm:$0xff]  ;;  %v304_v22 = vld [vmem:[%s544_s2] ss:$0 sm:$0xff]  ;;  %p456_p5 = pnand %p455_p4, %p449_p1 }
  0x2d   :  { %339 = vmatpush3.msra.mxu0 %v70_v6  ;;  %348 = vmatpush3.msra.mxu1 %v188_v7  ;;  %v307_v37 = vld [vmem:[%s546_s4] ss:$0 sm:$0xff] }
  0x2e   :  { %341 = vmatmul.mubr.msk.f32.vlgmr.msra.gmra.mxu0 %vm81_vm0, %v69_v8  ;;  %349 = vmatprep.subr.mxu1 %v187_v9 }
  0x2f   :  { %350 = vmatpush3.msra.mxu1 %v187_v9 }
  0x30   :  { %351 = vmatprep.subr.mxu1 %v186_v10 }
  0x31   :  { %352 = vmatpush3.msra.mxu1 %v186_v10 }
  0x32   :  { %353 = vmatprep.subr.mxu1 %v185_v11 }
  0x33   :  { %354 = vmatpush3.msra.mxu1 %v185_v11 }
  0x34   :  { %355 = vmatprep.subr.mxu1 %v184_v12 }
  0x35   :  { %356 = vmatpush3.msra.mxu1 %v184_v12 }
  0x36   :  { %357 = vmatprep.subr.mxu1 %v183_v13 }
  0x37   :  { %358 = vmatpush3.msra.mxu1 %v183_v13 }
  0x38   :  { %359 = vmatprep.subr.mxu1 %v182_v14 }
  0x39   :  { %360 = vmatpush3.msra.mxu1 %v182_v14 }
  0x3a   :  { %361 = vmatprep.subr.mxu1 %v181_v15 }
  0x3b   :  { %362 = vmatpush3.msra.mxu1 %v181_v15 }
  0x3c   :  { %363 = vmatprep.subr.mxu1 %v180_v16 }
  0x3d   :  { %364 = vmatpush3.msra.mxu1 %v180_v16 }
  0x3e   :  { %365 = vmatprep.subr.mxu1 %v179_v17 }
  0x3f   :  { %366 = vmatpush3.msra.mxu1 %v179_v17 }
  0x40   :  { %367 = vmatprep.subr.mxu1 %v178_v18 }
  0x41   :  { %368 = vmatpush3.msra.mxu1 %v178_v18 }
  0x42   :  { %369 = vmatprep.subr.mxu1 %v177_v19 }
  0x43   :  { %370 = vmatpush3.msra.mxu1 %v177_v19 }
  0x44   :  { %371 = vmatprep.subr.mxu1 %v176_v20 }
  0x45   :  { %372 = vmatpush3.msra.mxu1 %v176_v20 }
  0x46   :  { %373 = vmatprep.subr.mxu1 %v175_v21 }
  0x47   :  { %374 = vmatpush3.msra.mxu1 %v175_v21 }
  0xee   :  { %v342_v23 = vpop.f32.mrf.mxu0 }
  0xef   :  { %v160_v24 = vadd.f32 %v342_v23, %v304_v22 }
  0xf0   :  { %v154_v25 = vpop.f32.mrf.mxu0 }
  0xf1   :  { %v166_v26 = vmul.f32 0.70710677, %v160_v24  ;;  %v155_v27 = vadd.f32 %v304_v22, %v154_v25  ;;  %v164_v34 = vmul.f32 0.5, %v160_v24 }
  0xf3   :  { %384 = verf.f32 %v166_v26  ;;  %v165_v28 = vmul.f32 0.70710677, %v155_v27  ;;  %v163_v32 = vmul.f32 0.5, %v155_v27 }
  0xf5   :  { %386 = verf.f32 %v165_v28 }
 0x100   :  { %v385_v29 = vpop.eup %384 }
 0x101   :  { %v170_v31 = vadd.f32 1.0, %v385_v29 }
 0x102   :  { %v387_v30 = vpop.eup %386 }
 0x103   :  { %v169_v33 = vadd.f32 1.0, %v387_v30  ;;  %v172_v36 = vmul.f32 %v170_v31, %v164_v34 }
 0x105   :  { %v171_v35 = vmul.f32 %v169_v33, %v163_v32 }
 0x107   :  { %375 = vmatprep.mubr.f32.mxu1 %v171_v35 }
 0x108   :  { %376 = vmatmul.mubr.f32.vlgmr.msra.gmra.mxu1 %v172_v36 }
 0x1c8   :  { %v377_v38 = vpop.f32.mrf.mxu1 }
 0x1c9   :  { %v283_v39 = vadd.f32 %v377_v38, %v307_v37 }
 0x1ca   :  { %v257_v40 = vpop.f32.mrf.mxu1 }
 0x1cb   :  { %285 = vst [vmem:[#allocation9 + $0x8] sm:$0xff] %v283_v39  ;;  %v282_v41 = vadd.f32 %v307_v37, %v257_v40 }
 0x1cd   :  { %284 = vst [vmem:[#allocation9] sm:$0xff] %v282_v41 }
 0x1ce   :  { %459 = shalt.err (!%p456_p5)
}
 0x1cf   :  { %297 = dma.vmem_to_hbm [thread:$0]  %s292_s11, 256, %s547_s5, [#allocation5], %s476_s23, %s476_s23, %s477_s24  }
 0x1d0   :  { %472 = dma.done.wait [#allocation5], 256  }
 0x1d1   :  { %473 = vsyncadd [#allocation5], 4294967040 }
 0x1d2   :  { %301 = vsyncpa [#allocation4], 1 }
 0x1d3   :  { %302 = vsyncpa [#allocation7], 1 }
 0x1d4   :  { %303 = vsyncpa [#allocation5], 1 }

</bundles_post_ra>
